<compile_context>
chip_gen: v6e
topology: v6e:2x2x1
jax: 0.10.0
libtpu: 0.0.40
codegen_flags: <defaults>
</compile_context>

<pallas_src>
import functools

import jax
import jax.numpy as jnp
from jax.experimental import pallas as pl
from jax.experimental.pallas import tpu as pltpu


def _supcon_lse_kernel(a_ref, bt_ref, lse_ref, m_ref, l_ref, *,
                       inv_t, b_valid, blk_row, blk_col, has_pad, static_max):
    """Streaming masked logsumexp over one anchor-row tile.

    Grid: (row tiles [parallel], column tiles [arbitrary, reduction]).
    Masking (self-contrast exclusion + padded-column exclusion) is only paid on
    tiles that touch the diagonal or the padded tail.
    """
    i = pl.program_id(0)          # anchor-row tile
    j = pl.program_id(1)          # contrast-column tile (streaming reduction)
    nj = pl.num_programs(1)

    # ---- start of a new anchor-row tile: reset running state ----
    @pl.when(j == 0)
    def _init():
        l_ref[...] = jnp.zeros_like(l_ref)
        if static_max is None:
            m_ref[...] = jnp.full_like(m_ref, -jnp.inf)

    # ---- logits tile on the MXU: bf16 inputs, f32 accumulation; 1/T applied
    #      to the f32 result (no bf16 pre-scaling pass) ----
    s = jnp.dot(a_ref[...], bt_ref[...],
                preferred_element_type=jnp.float32) * inv_t

    if static_max is None:
        # streaming log-sum-exp with a running max
        m_prev = m_ref[...]
        m_new = jnp.maximum(m_prev, jnp.max(s, axis=1, keepdims=True))
        m_ref[...] = m_new
        l_scaled = jnp.exp(m_prev - m_new) * l_ref[...]
    else:
        # features are L2-normalized => s <= 1/T; static bound, no running max
        m_new = static_max
        l_scaled = l_ref[...]

    p = jnp.exp(s - m_new)

    # Only tiles touching the diagonal or the padded column tail need masks.
    row_start = i * blk_row
    col_start = j * blk_col
    touches_diag = jnp.logical_and(row_start < col_start + blk_col,
                                   col_start < row_start + blk_row)
    if has_pad:
        on_edge = jnp.logical_or(touches_diag, col_start + blk_col > b_valid)
    else:
        on_edge = touches_diag

    @pl.when(jnp.logical_not(on_edge))
    def _fast():                  # interior tiles: mask-free row sum
        l_ref[...] = l_scaled + jnp.sum(p, axis=1, keepdims=True)

    @pl.when(on_edge)
    def _edge():                  # diagonal / padded-tail tiles only
        row_g = row_start + jax.lax.broadcasted_iota(jnp.int32,
                                                     (blk_row, blk_col), 0)
        col_g = col_start + jax.lax.broadcasted_iota(jnp.int32,
                                                     (blk_row, blk_col), 1)
        keep = row_g != col_g                       # exclude self-contrast
        if has_pad:
            keep = jnp.logical_and(keep, col_g < b_valid)
        l_ref[...] = l_scaled + jnp.sum(jnp.where(keep, p, 0.0),
                                        axis=1, keepdims=True)

    # ---- finalize this anchor-row tile ----
    @pl.when(j == nj - 1)
    def _final():
        if static_max is None:
            lse_ref[...] = m_ref[...] + jnp.log(l_ref[...])
        else:
            lse_ref[...] = static_max + jnp.log(l_ref[...])


def _round_up(x, m):
    return (x + m - 1) // m * m


def supcon_loss(features, labels, temperature=0.07, base_temperature=0.07,
                assume_normalized=False):
    """SupConLoss forward. features: [B, D] float, labels: [B] int -> scalar."""
    # TODO(synk): the explicit pairwise `mask=` argument of the PyTorch module
    # is not implemented; only the `labels` path is supported.
    b, d = features.shape
    inv_t = 1.0 / temperature
    feats32 = features.astype(jnp.float32)
    lab = labels.reshape(-1).astype(jnp.int32)

    # ---- analytic positive-pair statistics, O(B*D), outside the kernel ------
    #   sml_i  = sum_{j!=i, y_j==y_i} <f_i, f_j>/T = (<f_i, S_{y_i}> - <f_i,f_i>)/T
    #   npos_i = |{j != i : y_j == y_i}|
    _, inv = jnp.unique(lab, size=b, return_inverse=True)
    inv = inv.reshape(-1)
    counts = jnp.zeros((b,), jnp.float32).at[inv].add(1.0)
    npos = counts[inv] - 1.0
    class_sum = jnp.zeros((b, d), jnp.float32).at[inv].add(feats32)
    sml = (jnp.sum(feats32 * class_sum[inv], axis=1)
           - jnp.sum(feats32 * feats32, axis=1)) * inv_t

    # ---- tile selection (sized against v7x's 64 MiB VMEM) -------------------
    d_pad = _round_up(max(d, 128), 128)
    blk_col = min(256, _round_up(b, 128))      # 256-wide N tile for v6e/v7x MXU
    blk_row = min(512, _round_up(b, 128))      # larger M tile -> higher AI
    blk_row = max(blk_row, blk_col)
    blk_row = (blk_row // blk_col) * blk_col   # keep blk_row a multiple of blk_col

    def vmem_est(br, bc):
        # double-buffered bf16 input tiles + f32 logits temporaries + slack
        return 2 * (br * d_pad * 2) + 2 * (d_pad * bc * 2) + 8 * br * bc + (1 << 20)

    budget = 44 << 20
    while vmem_est(blk_row, blk_col) > budget and blk_row > blk_col:
        blk_row -= blk_col
    while vmem_est(blk_row, blk_col) > budget and blk_col > 128:
        blk_col //= 2
        blk_row = blk_col

    b_pad = _round_up(b, blk_row)
    has_pad = b_pad != b

    feats_bf = jnp.pad(features.astype(jnp.bfloat16),
                       ((0, b_pad - b), (0, d_pad - d)))
    feats_t = feats_bf.T                       # pre-transposed contrast operand

    kernel = functools.partial(
        _supcon_lse_kernel,
        inv_t=inv_t, b_valid=b, blk_row=blk_row, blk_col=blk_col,
        has_pad=has_pad,
        static_max=inv_t if assume_normalized else None)

    grid = (b_pad // blk_row, b_pad // blk_col)
    lse = pl.pallas_call(
        kernel,
        out_shape=jax.ShapeDtypeStruct((b_pad, 1), jnp.float32),
        grid_spec=pltpu.PrefetchScalarGridSpec(
            num_scalar_prefetch=0,
            grid=grid,
            in_specs=[
                # anchors: resident across the column (reduction) axis
                pl.BlockSpec((blk_row, d_pad), lambda i, j: (i, 0)),
                # contrast (pre-transposed [D, B]): streams over j, double-buffered
                pl.BlockSpec((d_pad, blk_col), lambda i, j: (0, j)),
            ],
            out_specs=pl.BlockSpec((blk_row, 1), lambda i, j: (i, 0)),
            scratch_shapes=[
                pltpu.VMEM((blk_row, 1), jnp.float32),   # running max m
                pltpu.VMEM((blk_row, 1), jnp.float32),   # running exp-sum l
            ]),
        compiler_params=pltpu.CompilerParams(
            dimension_semantics=("parallel", "arbitrary"),
            vmem_limit_bytes=int(min(48 << 20,
                                     max(16 << 20,
                                         2 * vmem_est(blk_row, blk_col))))),
    )(feats_bf, feats_t)

    # Padded rows never reach the reduction: only the b valid rows are used.
    lse = lse[:b, 0]
    denom = jnp.where(npos > 0, npos, 1.0)
    mean_log_prob_pos = jnp.where(npos > 0, (sml - npos * lse) / denom, 0.0)
    loss = -(temperature / base_temperature) * mean_log_prob_pos
    # loss.view(anchor_count=1, B).mean()  ==  mean over the valid batch rows
    return jnp.mean(loss)


def supcon_loss_ref(features, labels, temperature=0.07, base_temperature=0.07):
    """Pure-JAX reference mirroring the PyTorch module."""
    b = features.shape[0]
    mask = (labels[:, None] == labels[None, :]).astype(jnp.float32)
    logits = (features @ features.T) / temperature
    logits = logits - jnp.max(logits, axis=1, keepdims=True)
    logits_mask = 1.0 - jnp.eye(b, dtype=jnp.float32)
    mask = mask * logits_mask
    exp_logits = jnp.exp(logits) * logits_mask
    log_prob = logits - jnp.log(jnp.sum(exp_logits, axis=1, keepdims=True))
    denom = jnp.sum(mask, axis=1)
    denom = jnp.where(denom == 0.0, 1.0, denom)
    mean_log_prob_pos = jnp.sum(mask * log_prob, axis=1) / denom
    loss = -(temperature / base_temperature) * mean_log_prob_pos
    return jnp.mean(loss)


if __name__ == "__main__":
    key = jax.random.PRNGKey(0)
    kf, kl, kf2, kl2, kf3, kl3 = jax.random.split(key, 6)

    # Small single-tile case (B=8, D=32; padded to one 128x128 tile).
    B, D = 8, 32
    features = jax.random.normal(kf, (B, D), dtype=jnp.float32)
    features = features / jnp.linalg.norm(features, axis=1, keepdims=True)
    labels = jax.random.randint(kl, (B,), 0, 3, dtype=jnp.int32)

    loss = jax.block_until_ready(supcon_loss(features, labels))
    ref = supcon_loss_ref(features, labels)
    # bf16 MXU inputs -> loosen tolerance vs. the f32 reference.
    assert jnp.allclose(loss, ref, atol=5e-2, rtol=5e-2), (loss, ref)

    # Row/column padding + the static-max (normalized-features) fast path
    # (B=200 -> padded to 256).
    B2, D2 = 200, 48
    features2 = jax.random.normal(kf2, (B2, D2), dtype=jnp.float32)
    features2 = features2 / jnp.linalg.norm(features2, axis=1, keepdims=True)
    labels2 = jax.random.randint(kl2, (B2,), 0, 7, dtype=jnp.int32)

    loss2 = jax.block_until_ready(
        supcon_loss(features2, labels2, assume_normalized=True))
    ref2 = supcon_loss_ref(features2, labels2)
    assert jnp.allclose(loss2, ref2, atol=5e-2, rtol=5e-2), (loss2, ref2)

    # Multi-tile 2-D grid exercising the interior fast path, diagonal gating
    # and padded-tail gating (B=700 -> padded to 1024 with 512x256 tiles).
    B3, D3 = 700, 96
    features3 = jax.random.normal(kf3, (B3, D3), dtype=jnp.float32)
    features3 = features3 / jnp.linalg.norm(features3, axis=1, keepdims=True)
    labels3 = jax.random.randint(kl3, (B3,), 0, 10, dtype=jnp.int32)

    loss3 = jax.block_until_ready(supcon_loss(features3, labels3))
    ref3 = supcon_loss_ref(features3, labels3)
    assert jnp.allclose(loss3, ref3, atol=5e-2, rtol=5e-2), (loss3, ref3)

    print("KERNEL_OK")
</pallas_src>

<mosaic_0001>
module attributes {stable_mosaic.version = 11 : i64} {
  func.func @_supcon_lse_kernel(%arg0: i32, %arg1: i32, %arg2: memref<128x128xbf16, #tpu.memory_space<vmem>>, %arg3: memref<128x128xbf16, #tpu.memory_space<vmem>>, %arg4: memref<128x1xf32, #tpu.memory_space<vmem>>, %arg5: memref<128x1xf32, #tpu.memory_space<vmem>>, %arg6: memref<128x1xf32, #tpu.memory_space<vmem>>) attributes {dimension_semantics = [#tpu.dimension_semantics<parallel>, #tpu.dimension_semantics<arbitrary>], iteration_bounds = array<i64: 1, 1>, scalar_prefetch = 0 : i64, scratch_operands = 2 : i64, tpu.core_type = #tpu.core_type<tc>, window_params = [{transform_indices = @transform_0, window_bounds = array<i64: 128, 128>}, {transform_indices = @transform_1, window_bounds = array<i64: 128, 128>}, {transform_indices = @transform_2, window_bounds = array<i64: 128, 1>}]} {
    %c0_i32 = arith.constant 0 : i32
    %0 = arith.cmpi eq, %arg1, %c0_i32 : i32
    %1 = arith.extui %0 : i1 to i32
    %c0_i32_0 = arith.constant 0 : i32
    %2 = arith.cmpi ne, %1, %c0_i32_0 : i32
    scf.if %2 {
      %cst_20 = arith.constant 0.000000e+00 : f32
      %38 = vector.broadcast %cst_20 : f32 to vector<128x1xf32>
      %c0_21 = arith.constant 0 : index
      %c0_22 = arith.constant 0 : index
      %39 = vector.load %arg6[%c0_21, %c0_22] : memref<128x1xf32, #tpu.memory_space<vmem>>, vector<128x1xf32>
      tpu.vector_store %arg6[%c0_21, %c0_22], %38 {strides = array<i32>} : memref<128x1xf32, #tpu.memory_space<vmem>>, vector<128x1xf32>,
      %cst_23 = arith.constant 0xFF800000 : f32
      %40 = vector.broadcast %cst_23 : f32 to vector<128x1xf32>
      %c0_24 = arith.constant 0 : index
      %c0_25 = arith.constant 0 : index
      %41 = vector.load %arg5[%c0_24, %c0_25] : memref<128x1xf32, #tpu.memory_space<vmem>>, vector<128x1xf32>
      tpu.vector_store %arg5[%c0_24, %c0_25], %40 {strides = array<i32>} : memref<128x1xf32, #tpu.memory_space<vmem>>, vector<128x1xf32>,
    } else {
    }
    %c0 = arith.constant 0 : index
    %c0_1 = arith.constant 0 : index
    %3 = vector.load %arg2[%c0, %c0_1] : memref<128x128xbf16, #tpu.memory_space<vmem>>, vector<128x128xbf16>
    %c0_2 = arith.constant 0 : index
    %c0_3 = arith.constant 0 : index
    %4 = vector.load %arg3[%c0_2, %c0_3] : memref<128x128xbf16, #tpu.memory_space<vmem>>, vector<128x128xbf16>
    %cst = arith.constant dense<0.000000e+00> : vector<128x128xf32>
    %5 = tpu.matmul %3, %4, %cst {dimension_numbers = #tpu.dot_dimension_numbers<[1], [0], [0], [1], [0, 0, 1, 1], [], []>} : vector<128x128xbf16>, vector<128x128xbf16>, vector<128x128xf32> -> vector<128x128xf32>
    %cst_4 = arith.constant 14.2857141 : f32
    %6 = vector.broadcast %cst_4 : f32 to vector<128x128xf32>
    %7 = arith.mulf %5, %6 : vector<128x128xf32>
    %c0_5 = arith.constant 0 : index
    %c0_6 = arith.constant 0 : index
    %8 = vector.load %arg5[%c0_5, %c0_6] : memref<128x1xf32, #tpu.memory_space<vmem>>, vector<128x1xf32>
    %cst_7 = arith.constant dense<0xFF800000> : vector<128xf32>
    %9 = vector.multi_reduction <maximumf>, %7, %cst_7 [1] : vector<128x128xf32> to vector<128xf32>
    %10 = vector.shape_cast %9 : vector<128xf32> to vector<128x1xf32>
    %11 = arith.maximumf %8, %10 : vector<128x1xf32>
    %c0_8 = arith.constant 0 : index
    %c0_9 = arith.constant 0 : index
    %12 = vector.load %arg5[%c0_8, %c0_9] : memref<128x1xf32, #tpu.memory_space<vmem>>, vector<128x1xf32>
    tpu.vector_store %arg5[%c0_8, %c0_9], %11 {strides = array<i32>} : memref<128x1xf32, #tpu.memory_space<vmem>>, vector<128x1xf32>,
    %13 = arith.subf %8, %11 : vector<128x1xf32>
    %14 = math.exp %13 : vector<128x1xf32>
    %c0_10 = arith.constant 0 : index
    %c0_11 = arith.constant 0 : index
    %15 = vector.load %arg6[%c0_10, %c0_11] : memref<128x1xf32, #tpu.memory_space<vmem>>, vector<128x1xf32>
    %16 = arith.mulf %14, %15 : vector<128x1xf32>
    %17 = vector.broadcast %11 : vector<128x1xf32> to vector<128x128xf32>
    %18 = arith.subf %7, %17 : vector<128x128xf32>
    %19 = math.exp %18 : vector<128x128xf32>
    %c128_i32 = arith.constant 128 : i32
    %20 = arith.muli %arg0, %c128_i32 : i32
    %c128_i32_12 = arith.constant 128 : i32
    %21 = arith.muli %arg1, %c128_i32_12 : i32
    %c128_i32_13 = arith.constant 128 : i32
    %22 = arith.addi %21, %c128_i32_13 : i32
    %23 = arith.cmpi slt, %20, %22 : i32
    %c128_i32_14 = arith.constant 128 : i32
    %24 = arith.addi %20, %c128_i32_14 : i32
    %25 = arith.cmpi slt, %21, %24 : i32
    %26 = arith.andi %23, %25 : i1
    %c128_i32_15 = arith.constant 128 : i32
    %27 = arith.addi %21, %c128_i32_15 : i32
    %c8_i32 = arith.constant 8 : i32
    %28 = arith.cmpi sgt, %27, %c8_i32 : i32
    %29 = arith.ori %26, %28 : i1
    %true = arith.constant true
    %30 = arith.xori %29, %true : i1
    %31 = arith.extui %30 : i1 to i32
    %c0_i32_16 = arith.constant 0 : i32
    %32 = arith.cmpi ne, %31, %c0_i32_16 : i32
    scf.if %32 {
      %cst_20 = arith.constant dense<0.000000e+00> : vector<128xf32>
      %38 = vector.multi_reduction <add>, %19, %cst_20 [1] : vector<128x128xf32> to vector<128xf32>
      %39 = vector.shape_cast %38 : vector<128xf32> to vector<128x1xf32>
      %40 = arith.addf %16, %39 : vector<128x1xf32>
      %c0_21 = arith.constant 0 : index
      %c0_22 = arith.constant 0 : index
      %41 = vector.load %arg6[%c0_21, %c0_22] : memref<128x1xf32, #tpu.memory_space<vmem>>, vector<128x1xf32>
      tpu.vector_store %arg6[%c0_21, %c0_22], %40 {strides = array<i32>} : memref<128x1xf32, #tpu.memory_space<vmem>>, vector<128x1xf32>,
    } else {
    }
    %33 = arith.extui %29 : i1 to i32
    %c0_i32_17 = arith.constant 0 : i32
    %34 = arith.cmpi ne, %33, %c0_i32_17 : i32
    scf.if %34 {
      %38 = tpu.iota {dimensions = array<i32: 0>} : vector<128x128xi32>
      %39 = vector.broadcast %20 : i32 to vector<128x128xi32>
      %40 = arith.addi %39, %38 : vector<128x128xi32>
      %41 = tpu.iota {dimensions = array<i32: 1>} : vector<128x128xi32>
      %42 = vector.broadcast %21 : i32 to vector<128x128xi32>
      %43 = arith.addi %42, %41 : vector<128x128xi32>
      %44 = arith.cmpi ne, %40, %43 : vector<128x128xi32>
      %c8_i32_20 = arith.constant 8 : i32
      %45 = vector.broadcast %c8_i32_20 : i32 to vector<128x128xi32>
      %46 = arith.cmpi slt, %43, %45 : vector<128x128xi32>
      %47 = arith.andi %44, %46 : vector<128x128xi1>
      %cst_21 = arith.constant 0.000000e+00 : f32
      %48 = vector.broadcast %cst_21 : f32 to vector<128x128xf32>
      %49 = arith.select %47, %19, %48 : vector<128x128xi1>, vector<128x128xf32>
      %cst_22 = arith.constant dense<0.000000e+00> : vector<128xf32>
      %50 = vector.multi_reduction <add>, %49, %cst_22 [1] : vector<128x128xf32> to vector<128xf32>
      %51 = vector.shape_cast %50 : vector<128xf32> to vector<128x1xf32>
      %52 = arith.addf %16, %51 : vector<128x1xf32>
      %c0_23 = arith.constant 0 : index
      %c0_24 = arith.constant 0 : index
      %53 = vector.load %arg6[%c0_23, %c0_24] : memref<128x1xf32, #tpu.memory_space<vmem>>, vector<128x1xf32>
      tpu.vector_store %arg6[%c0_23, %c0_24], %52 {strides = array<i32>} : memref<128x1xf32, #tpu.memory_space<vmem>>, vector<128x1xf32>,
    } else {
    }
    %c0_i32_18 = arith.constant 0 : i32
    %35 = arith.cmpi eq, %arg1, %c0_i32_18 : i32
    %36 = arith.extui %35 : i1 to i32
    %c0_i32_19 = arith.constant 0 : i32
    %37 = arith.cmpi ne, %36, %c0_i32_19 : i32
    scf.if %37 {
      %c0_20 = arith.constant 0 : index
      %c0_21 = arith.constant 0 : index
      %38 = vector.load %arg5[%c0_20, %c0_21] : memref<128x1xf32, #tpu.memory_space<vmem>>, vector<128x1xf32>
      %c0_22 = arith.constant 0 : index
      %c0_23 = arith.constant 0 : index
      %39 = vector.load %arg6[%c0_22, %c0_23] : memref<128x1xf32, #tpu.memory_space<vmem>>, vector<128x1xf32>
      %40 = math.log %39 : vector<128x1xf32>
      %41 = arith.addf %38, %40 : vector<128x1xf32>
      %c0_24 = arith.constant 0 : index
      %c0_25 = arith.constant 0 : index
      %42 = vector.load %arg4[%c0_24, %c0_25] : memref<128x1xf32, #tpu.memory_space<vmem>>, vector<128x1xf32>
      tpu.vector_store %arg4[%c0_24, %c0_25], %41 {strides = array<i32>} : memref<128x1xf32, #tpu.memory_space<vmem>>, vector<128x1xf32>,
    } else {
    }
    return
  }
  func.func @transform_0(%arg0: i32, %arg1: i32) -> (i32, i32) {
    %c0_i32 = arith.constant 0 : i32
    %c0_i32_0 = arith.constant 0 : i32
    return %arg0, %c0_i32 : i32, i32
  }
  func.func @transform_1(%arg0: i32, %arg1: i32) -> (i32, i32) {
    %c0_i32 = arith.constant 0 : i32
    %c0_i32_0 = arith.constant 0 : i32
    return %c0_i32, %arg1 : i32, i32
  }
  func.func @transform_2(%arg0: i32, %arg1: i32) -> (i32, i32) {
    %c0_i32 = arith.constant 0 : i32
    %c0_i32_0 = arith.constant 0 : i32
    return %arg0, %c0_i32 : i32, i32
  }
}

</mosaic_0001>

<bundles_post_ra>
// kernel: tpu_custom_call.1
= control target key start
LH: loop header
LB: loop body
LE: loop exit
PB: predicated region body
PF: predicated region fallthrough
CT: control target
= control target key end

     0   :  { %7 = vsyncpa [#allocation5], 0  ;;  %s1681_s0 = inlined_call_operand.hbm [shape: bf16[128,128], index: 0, kind: input, shape index: {}]   ;;  %s1682_s1 = inlined_call_operand.hbm [shape: bf16[128,128], index: 1, kind: input, shape index: {}]   ;;  %s1683_s2 = inlined_call_operand.vmem [shape: f32[128,1], index: 2, kind: output, shape index: {}]  }
   0x1   :  { %8 = vsyncpa [#allocation7], 0  ;;  %s1188_s9 = smov [#allocation4]  }
   0x2   :  { %s14_s10 = sshll.u32 %s1188_s9, 4  ;;  %s15_s10 = int_to_ptr.vmem [resolvable:$true] %s14_s10 }
   0x3   :  { %s1152_s11 = scalar_lea.vmem %s15_s10, 1024  ;;  %p1157_p1 = scmp.lt.s32.totalorder %s15_s10, %s15_s10 }
   0x4   :  { %p1153_p0 = scmp.ne.s32.totalorder %s15_s10, %s1152_s11  ;;  %p1158_p2 = scmp.lt.s32.totalorder %s1152_s11, %s1152_s11 }
   0x6   :  { %p1159_p3 = por %p1158_p2, %p1157_p1 }
   0x8   :  { %p1160_p4 = pnand %p1159_p3, %p1153_p0 }
   0xa   :  { %1163 = shalt.err (!%p1160_p4)
}
   0xb   :  { %s1189_s12 = smov 64   ;;  %s1190_s13 = smov 4  }
   0xc   :  { %20 = dma.hbm_to_vmem [thread:$0]  %s1681_s0, 1024, %s15_s10, [#allocation5], %s1189_s12, %s1189_s12, %s1190_s13  }
   0xd   :  { %s1191_s16 = smov [#allocation6]  }
   0xe   :  { %s26_s17 = sshll.u32 %s1191_s16, 4  ;;  %s27_s17 = int_to_ptr.vmem [resolvable:$true] %s26_s17 }
   0xf   :  { %s1172_s18 = scalar_lea.vmem %s27_s17, 1024  ;;  %p1177_p6 = scmp.lt.s32.totalorder %s27_s17, %s27_s17 }
  0x10   :  { %p1173_p5 = scmp.ne.s32.totalorder %s27_s17, %s1172_s18  ;;  %p1178_p7 = scmp.lt.s32.totalorder %s1172_s18, %s1172_s18 }
  0x12   :  { %p1179_p8 = por %p1178_p7, %p1177_p6 }
  0x14   :  { %p1180_p9 = pnand %p1179_p8, %p1173_p5 }
  0x16   :  { %1183 = shalt.err (!%p1180_p9)
}
  0x17   :  { %32 = dma.hbm_to_vmem [thread:$0]  %s1682_s1, 1024, %s27_s17, [#allocation7], %s1189_s12, %s1189_s12, %s1190_s13  }
  0x18   :  { %1184 = dma.done.wait [#allocation5], 1024  }
  0x19   :  { %1185 = vsyncadd [#allocation5], 4294966272 }
  0x1a   :  { %1186 = dma.done.wait [#allocation7], 1024  }
  0x1b   :  { %1187 = vsyncadd [#allocation7], 4294966272  ;;  %v1032_v0 = vld [vmem:[#allocation6 + $0x38] sm:$0xff]   ;;  %v1033_v1 = vld [vmem:[#allocation6 + $0x30] sm:$0xff]   ;;  %vm44_vm0 = vcmask 7168   ;;  %v1192_v16 = vmov -inf  }
  0x1c   :  { %975 = vmatprep.subr.bf16.mxu0 %v1032_v0  ;;  %1007 = vmatprep.subr.bf16.mxu1 %v1032_v0  ;;  %v1034_v2 = vld [vmem:[#allocation6 + $0x28] sm:$0xff]   ;;  %v1035_v3 = vld [vmem:[#allocation6 + $0x20] sm:$0xff]   ;;  %v1036_v6 = vld [vmem:[#allocation6 + $0x18] sm:$0xff]   ;;  %71 = vst.msk [vmem:[#allocation2 + $0x50] sm:$0xff] %vm44_vm0, %v1192_v16  ;;  %v1193_v41 = vmov 0   ;;  %v1194_v48 = vmov 0.0  }
  0x1d   :  { %976 = vmatpush3.bf16.msra.mxu0 %v1032_v0  ;;  %1015 = vmatpush3.bf16.msra.mxu1 %v1032_v0  ;;  %v1040_v4 = vld [vmem:[#allocation4] sm:$0xff]   ;;  %v1037_v7 = vld [vmem:[#allocation6 + $0x10] sm:$0xff]   ;;  %v1038_v8 = vld [vmem:[#allocation6 + $0x8] sm:$0xff]   ;;  %61 = vst.msk [vmem:[#allocation2] sm:$0xff] %vm44_vm0, %v1192_v16 }
  0x1e   :  { %977 = vmatprep.subr.bf16.mxu0 %v1033_v1  ;;  %1008 = vmatprep.subr.bf16.mxu1 %v1033_v1  ;;  %v1041_v5 = vld [vmem:[#allocation4 + $0x20] sm:$0xff]   ;;  %v1042_v10 = vld [vmem:[#allocation4 + $0x8] sm:$0xff]   ;;  %v1044_v12 = vld [vmem:[#allocation4 + $0x10] sm:$0xff]   ;;  %62 = vst.msk [vmem:[#allocation2 + $0x8] sm:$0xff] %vm44_vm0, %v1192_v16 }
  0x1f   :  { %991 = vmatprep.mubr.bf16.mxu0 %v1040_v4  ;;  %999 = vmatprep.mubr.bf16.mxu1 %v1041_v5  ;;  %v1039_v9 = vld [vmem:[#allocation6] sm:$0xff]   ;;  %v1043_v11 = vld [vmem:[#allocation4 + $0x28] sm:$0xff]   ;;  %v1046_v13 = vld [vmem:[#allocation4 + $0x30] sm:$0xff]   ;;  %63 = vst.msk [vmem:[#allocation2 + $0x10] sm:$0xff] %vm44_vm0, %v1192_v16 }
  0x20   :  { %v1045_v14 = vld [vmem:[#allocation4 + $0x18] sm:$0xff]   ;;  %64 = vst.msk [vmem:[#allocation2 + $0x18] sm:$0xff] %vm44_vm0, %v1192_v16  ;;  %65 = vst.msk [vmem:[#allocation2 + $0x20] sm:$0xff] %vm44_vm0, %v1192_v16  ;;  %1030 = vset.pattern.permute.xlu1 %v1193_v41  ;;  %1031 = vset.pattern.permute.xlu0 %v1193_v41 }
  0x21   :  { %978 = vmatpush3.bf16.msra.mxu0 %v1033_v1  ;;  %1016 = vmatpush3.bf16.msra.mxu1 %v1033_v1  ;;  %v1047_v15 = vld [vmem:[#allocation4 + $0x38] sm:$0xff]   ;;  %66 = vst.msk [vmem:[#allocation2 + $0x28] sm:$0xff] %vm44_vm0, %v1192_v16  ;;  %67 = vst.msk [vmem:[#allocation2 + $0x30] sm:$0xff] %vm44_vm0, %v1192_v16 }
  0x22   :  { %979 = vmatprep.subr.bf16.mxu0 %v1034_v2  ;;  %1009 = vmatprep.subr.bf16.mxu1 %v1034_v2  ;;  %68 = vst.msk [vmem:[#allocation2 + $0x38] sm:$0xff] %vm44_vm0, %v1192_v16  ;;  %69 = vst.msk [vmem:[#allocation2 + $0x40] sm:$0xff] %vm44_vm0, %v1192_v16 }
  0x23   :  { %70 = vst.msk [vmem:[#allocation2 + $0x48] sm:$0xff] %vm44_vm0, %v1192_v16  ;;  %72 = vst.msk [vmem:[#allocation2 + $0x58] sm:$0xff] %vm44_vm0, %v1192_v16  ;;  %v1296_v51 = vld [vmem:[#allocation2 + $0x50] sm:$0xff] }
  0x24   :  { %73 = vst.msk [vmem:[#allocation2 + $0x60] sm:$0xff] %vm44_vm0, %v1192_v16  ;;  %74 = vst.msk [vmem:[#allocation2 + $0x68] sm:$0xff] %vm44_vm0, %v1192_v16  ;;  %v1306_v57 = vld [vmem:[#allocation2] sm:$0xff] }
  0x25   :  { %980 = vmatpush3.bf16.msra.mxu0 %v1034_v2  ;;  %1017 = vmatpush3.bf16.msra.mxu1 %v1034_v2  ;;  %75 = vst.msk [vmem:[#allocation2 + $0x70] sm:$0xff] %vm44_vm0, %v1192_v16  ;;  %76 = vst.msk [vmem:[#allocation2 + $0x78] sm:$0xff] %vm44_vm0, %v1192_v16 }
  0x26   :  { %981 = vmatprep.subr.bf16.mxu0 %v1035_v3  ;;  %1010 = vmatprep.subr.bf16.mxu1 %v1035_v3  ;;  %47 = vst.msk [vmem:[#allocation3 + $0x10] sm:$0xff] %vm44_vm0, %v1194_v48  ;;  %45 = vst.msk [vmem:[#allocation3] sm:$0xff] %vm44_vm0, %v1194_v48  ;;  %v1298_v52 = vld [vmem:[#allocation2 + $0x10] sm:$0xff] }
  0x27   :  { %46 = vst.msk [vmem:[#allocation3 + $0x8] sm:$0xff] %vm44_vm0, %v1194_v48  ;;  %48 = vst.msk [vmem:[#allocation3 + $0x18] sm:$0xff] %vm44_vm0, %v1194_v48  ;;  %v1308_v58 = vld [vmem:[#allocation2 + $0x18] sm:$0xff] }
  0x28   :  { %49 = vst.msk [vmem:[#allocation3 + $0x20] sm:$0xff] %vm44_vm0, %v1194_v48  ;;  %50 = vst.msk [vmem:[#allocation3 + $0x28] sm:$0xff] %vm44_vm0, %v1194_v48 }
  0x29   :  { %982 = vmatpush3.bf16.msra.mxu0 %v1035_v3  ;;  %1018 = vmatpush3.bf16.msra.mxu1 %v1035_v3  ;;  %51 = vst.msk [vmem:[#allocation3 + $0x30] sm:$0xff] %vm44_vm0, %v1194_v48  ;;  %52 = vst.msk [vmem:[#allocation3 + $0x38] sm:$0xff] %vm44_vm0, %v1194_v48  ;;  %v1325_v1 = vld [vmem:[#allocation2 + $0x40] sm:$0xff] }
  0x2a   :  { %983 = vmatprep.subr.bf16.mxu0 %v1036_v6  ;;  %1011 = vmatprep.subr.bf16.mxu1 %v1036_v6  ;;  %53 = vst.msk [vmem:[#allocation3 + $0x40] sm:$0xff] %vm44_vm0, %v1194_v48  ;;  %54 = vst.msk [vmem:[#allocation3 + $0x48] sm:$0xff] %vm44_vm0, %v1194_v48  ;;  %v1327_v2 = vld [vmem:[#allocation2 + $0x58] sm:$0xff] }
  0x2b   :  { %55 = vst.msk [vmem:[#allocation3 + $0x50] sm:$0xff] %vm44_vm0, %v1194_v48  ;;  %56 = vst.msk [vmem:[#allocation3 + $0x58] sm:$0xff] %vm44_vm0, %v1194_v48 }
  0x2c   :  { %57 = vst.msk [vmem:[#allocation3 + $0x60] sm:$0xff] %vm44_vm0, %v1194_v48  ;;  %58 = vst.msk [vmem:[#allocation3 + $0x68] sm:$0xff] %vm44_vm0, %v1194_v48 }
  0x2d   :  { %984 = vmatpush3.bf16.msra.mxu0 %v1036_v6  ;;  %1019 = vmatpush3.bf16.msra.mxu1 %v1036_v6  ;;  %59 = vst.msk [vmem:[#allocation3 + $0x70] sm:$0xff] %vm44_vm0, %v1194_v48  ;;  %60 = vst.msk [vmem:[#allocation3 + $0x78] sm:$0xff] %vm44_vm0, %v1194_v48  ;;  %v1406_v48 = vld [vmem:[#allocation2 + $0x28] sm:$0xff] }
  0x2e   :  { %985 = vmatprep.subr.bf16.mxu0 %v1037_v7  ;;  %1012 = vmatprep.subr.bf16.mxu1 %v1037_v7 }
  0x31   :  { %986 = vmatpush3.bf16.msra.mxu0 %v1037_v7  ;;  %1020 = vmatpush3.bf16.msra.mxu1 %v1037_v7 }
  0x32   :  { %987 = vmatprep.subr.bf16.mxu0 %v1038_v8  ;;  %1013 = vmatprep.subr.bf16.mxu1 %v1038_v8 }
  0x35   :  { %988 = vmatpush3.bf16.msra.mxu0 %v1038_v8  ;;  %1021 = vmatpush3.bf16.msra.mxu1 %v1038_v8 }
  0x36   :  { %989 = vmatprep.subr.bf16.mxu0 %v1039_v9  ;;  %1014 = vmatprep.subr.bf16.mxu1 %v1039_v9 }
  0x39   :  { %990 = vmatpush3.bf16.msra.mxu0 %v1039_v9  ;;  %1022 = vmatpush3.bf16.msra.mxu1 %v1039_v9  ;;  %v1345_v9 = vld [vmem:[#allocation2 + $0x48] sm:$0xff] }
  0x3c   :  { %992 = vmatmul.mubr.bf16.vlgmr.msra.gmra.mxu0 %v1042_v10  ;;  %1000 = vmatmul.mubr.bf16.vlgmr.msra.gmra.mxu1 %v1043_v11  ;;  %v1347_v10 = vld [vmem:[#allocation2 + $0x8] sm:$0xff] }
  0x3d   :  { %995 = vmatprep.mubr.bf16.mxu0 %v1044_v12  ;;  %1003 = vmatprep.mubr.bf16.mxu1 %v1046_v13 }
  0x44   :  { %996 = vmatmul.mubr.bf16.gmra.mxu0 %v1045_v14  ;;  %1004 = vmatmul.mubr.bf16.gmra.mxu1 %v1047_v15 }
  0xfc   :  { %v993_v17 = vpop.f32.mrf.mxu0  ;;  %v1001_v18 = vpop.f32.mrf.mxu1 }
  0xfd   :  { %v1232_v19 = vmul.f32 14.285714, %v993_v17  ;;  %v1234_v20 = vmul.f32 14.285714, %v1001_v18  ;;  %v1365_v17 = vld [vmem:[#allocation2 + $0x30] sm:$0xff]  ;;  %v1367_v18 = vld [vmem:[#allocation2 + $0x38] sm:$0xff] }
  0xfe   :  { %v239_v21 = vpop.f32.mrf.mxu0  ;;  %v271_v22 = vpop.f32.mrf.mxu1 }
  0xff   :  { %354 = vmax.xlane.f32.xlu0 %v1234_v20  ;;  %338 = vmax.xlane.f32.xlu1 %v1232_v19  ;;  %v1238_v25 = vmul.f32 14.285714, %v239_v21  ;;  %v1244_v31 = vmul.f32 14.285714, %v271_v22 }
 0x100   :  { %v994_v23 = vpop.f32.mrf.mxu0  ;;  %v1002_v24 = vpop.f32.mrf.mxu1 }
 0x101   :  { %v1240_v26 = vmul.f32 14.285714, %v994_v23  ;;  %v1246_v32 = vmul.f32 14.285714, %v1002_v24 }
 0x102   :  { %v242_v27 = vpop.f32.mrf.mxu0  ;;  %v274_v28 = vpop.f32.mrf.mxu1 }
 0x103   :  { %334 = vmax.xlane.f32.xlu0 %v1238_v25  ;;  %340 = vmax.xlane.f32.xlu1 %v1240_v26  ;;  %v1250_v36 = vmul.f32 14.285714, %v242_v27  ;;  %v1252_v37 = vmul.f32 14.285714, %v274_v28 }
 0x104   :  { %v997_v29 = vpop.f32.mrf.mxu0  ;;  %v1005_v30 = vpop.f32.mrf.mxu1 }
 0x105   :  { %v1254_v38 = vmul.f32 14.285714, %v997_v29  ;;  %v1290_v49 = vmul.f32 14.285714, %v1005_v30  ;;  %v1385_v29 = vld [vmem:[#allocation2 + $0x20] sm:$0xff]  ;;  %v1387_v30 = vld [vmem:[#allocation2 + $0x78] sm:$0xff] }
 0x106   :  { %v255_v33 = vpop.f32.mrf.mxu0  ;;  %v287_v35 = vpop.f32.mrf.mxu1 }
 0x107   :  { %350 = vmax.xlane.f32.xlu0 %v1244_v31  ;;  %356 = vmax.xlane.f32.xlu1 %v1246_v32  ;;  %v1260_v42 = vmul.f32 14.285714, %v255_v33  ;;  %v1266_v45 = vmul.f32 14.285714, %v287_v35 }
 0x108   :  { %v998_v34 = vpop.f32.mrf.mxu0  ;;  %v1006_v40 = vpop.f32.mrf.mxu1 }
 0x109   :  { %v1258_v39 = vmul.f32 14.285714, %v998_v34  ;;  %v1264_v43 = vmul.f32 14.285714, %v1006_v40 }
 0x10a   :  { %v258_v44 = vpop.f32.mrf.mxu0  ;;  %v290_v47 = vpop.f32.mrf.mxu1 }
 0x10b   :  { %352 = vmax.xlane.f32.xlu1 %v1252_v37  ;;  %336 = vmax.xlane.f32.xlu0 %v1250_v36  ;;  %v1270_v46 = vmul.f32 14.285714, %v258_v44  ;;  %v1292_v50 = vmul.f32 14.285714, %v290_v47  ;;  %v1404_v47 = vld [vmem:[#allocation2 + $0x60] sm:$0xff] }
 0x10f   :  { %346 = vmax.xlane.f32.xlu0 %v1254_v38  ;;  %348 = vmax.xlane.f32.xlu1 %v1258_v39 }
 0x113   :  { %342 = vmax.xlane.f32.xlu0 %v1260_v42  ;;  %364 = vmax.xlane.f32.xlu1 %v1264_v43 }
 0x117   :  { %358 = vmax.xlane.f32.xlu0 %v1266_v45  ;;  %344 = vmax.xlane.f32.xlu1 %v1270_v46 }
 0x11b   :  { %362 = vmax.xlane.f32.xlu0 %v1290_v49  ;;  %360 = vmax.xlane.f32.xlu1 %v1292_v50 }
 0x188   :  { %v355_v53 = vpop.xlane.xlu0 %354  ;;  %v339_v54 = vpop.xlane.xlu1 %338 }
 0x189   :  { %v1301_v55 = vmax.f32 %v1296_v51, %v355_v53  ;;  %v1304_v56 = vmax.f32 %v1298_v52, %v339_v54 }
 0x18b   :  { %393 = vst.msk [vmem:[#allocation2 + $0x50] sm:$0xff] %vm44_vm0, %v1301_v55  ;;  %385 = vst.msk [vmem:[#allocation2 + $0x10] sm:$0xff] %vm44_vm0, %v1304_v56  ;;  %491 = vperm.xlu1 %1030, %v1304_v56  }
 0x18c   :  { %v335_v61 = vpop.xlane.xlu0 %334  ;;  %v341_v62 = vpop.xlane.xlu1 %340 }
 0x18d   :  { %v1320_v63 = vmax.f32 %v1306_v57, %v335_v61  ;;  %v1323_v0 = vmax.f32 %v1308_v58, %v341_v62 }
 0x18f   :  { %383 = vst.msk [vmem:[#allocation2] sm:$0xff] %vm44_vm0, %v1320_v63  ;;  %386 = vst.msk [vmem:[#allocation2 + $0x18] sm:$0xff] %vm44_vm0, %v1323_v0  ;;  %531 = vperm.xlu1 %1030, %v1301_v55   ;;  %481 = vperm.xlu0 %1031, %v1320_v63  }
 0x190   :  { %v351_v5 = vpop.xlane.xlu0 %350  ;;  %v357_v6 = vpop.xlane.xlu1 %356 }
 0x191   :  { %v1340_v7 = vmax.f32 %v1325_v1, %v351_v5  ;;  %v1343_v8 = vmax.f32 %v1327_v2, %v357_v6 }
 0x193   :  { %391 = vst.msk [vmem:[#allocation2 + $0x40] sm:$0xff] %vm44_vm0, %v1340_v7  ;;  %394 = vst.msk [vmem:[#allocation2 + $0x58] sm:$0xff] %vm44_vm0, %v1343_v8  ;;  %521 = vperm.xlu1 %1030, %v1340_v7   ;;  %536 = vperm.xlu0 %1031, %v1343_v8  }
 0x194   :  { %v353_v13 = vpop.xlane.xlu1 %352  ;;  %v337_v14 = vpop.xlane.xlu0 %336 }
 0x195   :  { %v1360_v15 = vmax.f32 %v1345_v9, %v353_v13  ;;  %v1363_v16 = vmax.f32 %v1347_v10, %v337_v14  ;;  %v1423_v13 = vld [vmem:[#allocation2 + $0x70] sm:$0xff]  ;;  %v1425_v14 = vld [vmem:[#allocation2 + $0x68] sm:$0xff] }
 0x197   :  { %392 = vst.msk [vmem:[#allocation2 + $0x48] sm:$0xff] %vm44_vm0, %v1360_v15  ;;  %384 = vst.msk [vmem:[#allocation2 + $0x8] sm:$0xff] %vm44_vm0, %v1363_v16  ;;  %496 = vperm.xlu1 %1030, %v1323_v0   ;;  %526 = vperm.xlu0 %1031, %v1360_v15  }
 0x198   :  { %v347_v23 = vpop.xlane.xlu0 %346  ;;  %v349_v24 = vpop.xlane.xlu1 %348 }
 0x199   :  { %v1380_v27 = vmax.f32 %v1365_v17, %v347_v23  ;;  %v1383_v28 = vmax.f32 %v1367_v18, %v349_v24 }
 0x19b   :  { %389 = vst.msk [vmem:[#allocation2 + $0x30] sm:$0xff] %vm44_vm0, %v1380_v27  ;;  %390 = vst.msk [vmem:[#allocation2 + $0x38] sm:$0xff] %vm44_vm0, %v1383_v28  ;;  %486 = vperm.xlu1 %1030, %v1363_v16  }
 0x19c   :  { %v343_v35 = vpop.xlane.xlu0 %342  ;;  %v365_v40 = vpop.xlane.xlu1 %364 }
 0x19d   :  { %v1399_v41 = vmax.f32 %v1385_v29, %v343_v35  ;;  %v1402_v44 = vmax.f32 %v1387_v30, %v365_v40 }
 0x19f   :  { %387 = vst.msk [vmem:[#allocation2 + $0x20] sm:$0xff] %vm44_vm0, %v1399_v41  ;;  %398 = vst.msk [vmem:[#allocation2 + $0x78] sm:$0xff] %vm44_vm0, %v1402_v44  ;;  %511 = vperm.xlu1 %1030, %v1380_v27  }
 0x1a0   :  { %v359_v61 = vpop.xlane.xlu0 %358  ;;  %v345_v62 = vpop.xlane.xlu1 %344 }
 0x1a1   :  { %v1418_v5 = vmax.f32 %v1404_v47, %v359_v61  ;;  %v1421_v6 = vmax.f32 %v1406_v48, %v345_v62 }
 0x1a3   :  { %395 = vst.msk [vmem:[#allocation2 + $0x60] sm:$0xff] %vm44_vm0, %v1418_v5  ;;  %388 = vst.msk [vmem:[#allocation2 + $0x28] sm:$0xff] %vm44_vm0, %v1421_v6  ;;  %501 = vperm.xlu1 %1030, %v1399_v41  }
 0x1a4   :  { %v363_v35 = vpop.xlane.xlu0 %362  ;;  %v361_v40 = vpop.xlane.xlu1 %360 }
 0x1a5   :  { %v1437_v61 = vmax.f32 %v1423_v13, %v363_v35  ;;  %v1440_v62 = vmax.f32 %v1425_v14, %v361_v40  ;;  %v620_v40 = vlaneseq }
 0x1a7   :  { %397 = vst.msk [vmem:[#allocation2 + $0x70] sm:$0xff] %vm44_vm0, %v1437_v61  ;;  %396 = vst.msk [vmem:[#allocation2 + $0x68] sm:$0xff] %vm44_vm0, %v1440_v62  ;;  %541 = vperm.xlu1 %1030, %v1418_v5   ;;  %546 = vperm.xlu0 %1031, %v1440_v62   ;;  %v1457_v24 = vshrl.u32 %v620_v40, 7  ;;  %v1462_v59 = vand.u32 127, %v620_v40 }
 0x1a9   :  { %v623_v3 = vadd.s32 16, %v1457_v24  ;;  %vm674_vm2 = vcmp.lt.s32.totalorder %v1462_v59, 8  ;;  %vm658_vm5 = vcmp.ne.s32.totalorder %v1457_v24, %v1462_v59 }
 0x1aa   :  { %vm675_vm7 = vmand %vm658_vm5, %vm674_vm2 }
 0x1ab   :  { %516 = vperm.xlu1 %1030, %v1383_v28   ;;  %556 = vperm.xlu0 %1031, %v1402_v44   ;;  %vm660_vm1 = vcmp.ne.s32.totalorder %v623_v3, %v1462_v59  ;;  %v629_v3 = vadd.s32 64, %v1457_v24 }
 0x1ac   :  { %vm677_vm3 = vmand %vm660_vm1, %vm674_vm2 }
 0x1ad   :  { %vm666_vm8 = vcmp.ne.s32.totalorder %v629_v3, %v1462_v59 }
 0x1ae   :  { %vm683_vm9 = vmand %vm666_vm8, %vm674_vm2 }
 0x1af   :  { %506 = vperm.xlu1 %1030, %v1421_v6  }
 0x1b3   :  { %551 = vperm.xlu1 %1030, %v1437_v61  }
 0x206   :  { %v492_v35 = vpop.permute.xlu1 %491 }
 0x207   :  { %v561_v54 = vsub.f32 %v1232_v19, %v492_v35 }
 0x209   :  { %v579_v34 = vmul.f32 1.442695, %v561_v54 }
 0x20a   :  { %v532_v23 = vpop.permute.xlu1 %531  ;;  %v482_v53 = vpop.permute.xlu0 %481 }
 0x20b   :  { %1048 = vpow2.f32 %v579_v34  ;;  %v569_v33 = vsub.f32 %v1234_v20, %v532_v23  ;;  %v559_v21 = vsub.f32 %v1238_v25, %v482_v53  ;;  %v631_v25 = vadd.s32 80, %v1457_v24 }
 0x20d   :  { %v595_v22 = vmul.f32 1.442695, %v569_v33  ;;  %v575_v12 = vmul.f32 1.442695, %v559_v21  ;;  %vm668_vm4 = vcmp.ne.s32.totalorder %v631_v25, %v1462_v59 }
 0x20e   :  { %v522_v4 = vpop.permute.xlu1 %521  ;;  %v537_v11 = vpop.permute.xlu0 %536  ;;  %vm685_vm6 = vmand %vm668_vm4, %vm674_vm2 }
 0x20f   :  { %1050 = vpow2.f32 %v595_v22  ;;  %v567_v19 = vsub.f32 %v1244_v31, %v522_v4  ;;  %v570_v35 = vsub.f32 %v1246_v32, %v537_v11 }
 0x210   :  { %1052 = vpow2.f32 %v575_v12 }
 0x211   :  { %v591_v54 = vmul.f32 1.442695, %v567_v19  ;;  %v597_v21 = vmul.f32 1.442695, %v570_v35 }
 0x212   :  { %v497_v34 = vpop.permute.xlu1 %496  ;;  %v527_v60 = vpop.permute.xlu0 %526 }
 0x213   :  { %1054 = vpow2.f32 %v591_v54  ;;  %v562_v20 = vsub.f32 %v1240_v26, %v497_v34  ;;  %v568_v22 = vsub.f32 %v1252_v37, %v527_v60  ;;  %v624_v60 = vadd.s32 24, %v1457_v24 }
 0x215   :  { %v581_v33 = vmul.f32 1.442695, %v562_v20  ;;  %v593_v4 = vmul.f32 1.442695, %v568_v22  ;;  %vm661_vm10 = vcmp.ne.s32.totalorder %v624_v60, %v1462_v59  ;;  %v622_v20 = vadd.s32 8, %v1457_v24 }
 0x216   :  { %v487_v31 = vpop.permute.xlu1 %486  ;;  %vm678_vm11 = vmand %vm661_vm10, %vm674_vm2  ;;  %v625_v60 = vadd.s32 32, %v1457_v24 }
 0x217   :  { %1056 = vpow2.f32 %v581_v33  ;;  %v560_v32 = vsub.f32 %v1250_v36, %v487_v31  ;;  %v630_v31 = vadd.s32 72, %v1457_v24  ;;  %vm659_vm13 = vcmp.ne.s32.totalorder %v622_v20, %v1462_v59 }
 0x218   :  { %v1049_v26 = vpop.eup %1048  ;;  %1058 = vpow2.f32 %v597_v21  ;;  %vm676_vm15 = vmand %vm659_vm13, %vm674_vm2  ;;  %v633_v20 = vadd.s32 96, %v1457_v24 }
 0x219   :  { %v577_v11 = vmul.f32 1.442695, %v560_v32  ;;  %v693_v12 = vsel %vm677_vm3, %v1049_v26, 0.0  ;;  %v627_v32 = vadd.s32 48, %v1457_v24  ;;  %vm667_vm1 = vcmp.ne.s32.totalorder %v630_v31, %v1462_v59 }
 0x21a   :  { %v512_v37 = vpop.permute.xlu1 %511  ;;  %711 = vadd.xlane.f32.xlu0 %v693_v12  ;;  %vm1515_vm4 = vmand %vm667_vm1, %vm674_vm2  ;;  %vm670_vm8 = vcmp.ne.s32.totalorder %v633_v20, %v1462_v59  ;;  %v626_v12 = vadd.s32 40, %v1457_v24 }
 0x21b   :  { %1060 = vpow2.f32 %v577_v11  ;;  %v565_v36 = vsub.f32 %v1254_v38, %v512_v37  ;;  %v632_v38 = vadd.s32 88, %v1457_v24  ;;  %vm664_vm3 = vcmp.ne.s32.totalorder %v627_v32, %v1462_v59 }
 0x21c   :  { %v1051_v53 = vpop.eup %1050  ;;  %1062 = vpow2.f32 %v593_v4  ;;  %vm681_vm5 = vmand %vm664_vm3, %vm674_vm2 }
 0x21d   :  { %v1053_v23 = vpop.eup %1052  ;;  %v587_v40 = vmul.f32 1.442695, %v565_v36  ;;  %v701_v19 = vsel %vm685_vm6, %v1051_v53, 0.0  ;;  %vm669_vm12 = vcmp.ne.s32.totalorder %v632_v38, %v1462_v59  ;;  %vm662_vm6 = vcmp.ne.s32.totalorder %v625_v60, %v1462_v59 }
 0x21e   :  { %v502_v54 = vpop.permute.xlu1 %501  ;;  %727 = vadd.xlane.f32.xlu0 %v701_v19  ;;  %v691_v35 = vsel %vm675_vm7, %v1053_v23, 0.0  ;;  %vm1500_vm14 = vmand %vm669_vm12, %vm674_vm2  ;;  %vm663_vm12 = vcmp.ne.s32.totalorder %v626_v12, %v1462_v59 }
 0x21f   :  { %1064 = vpow2.f32 %v587_v40  ;;  %v563_v34 = vsub.f32 %v1260_v42, %v502_v54  ;;  %707 = vadd.xlane.f32.xlu1 %v691_v35  ;;  %vm679_vm7 = vmand %vm662_vm6, %vm674_vm2 }
 0x220   :  { %v1055_v25 = vpop.eup %1054  ;;  %vm680_vm13 = vmand %vm663_vm12, %vm674_vm2 }
 0x221   :  { %v583_v21 = vmul.f32 1.442695, %v563_v34  ;;  %v699_v33 = vsel %vm683_vm9, %v1055_v25, 0.0  ;;  %vm687_vm9 = vmand %vm670_vm8, %vm674_vm2 }
 0x222   :  { %v542_v22 = vpop.permute.xlu1 %541  ;;  %723 = vadd.xlane.f32.xlu0 %v699_v33  ;;  %v547_v26 = vpop.permute.xlu0 %546 }
 0x223   :  { %1066 = vpow2.f32 %v583_v21  ;;  %v571_v42 = vsub.f32 %v1266_v45, %v542_v22  ;;  %v572_v23 = vsub.f32 %v1292_v50, %v547_v26 }
 0x224   :  { %v1057_v3 = vpop.eup %1056 }
 0x225   :  { %v599_v4 = vmul.f32 1.442695, %v571_v42  ;;  %v694_v11 = vsel %vm678_vm11, %v1057_v3, 0.0  ;;  %v1059_v37 = vpop.eup %1058  ;;  %v601_v21 = vmul.f32 1.442695, %v572_v23  ;;  %v628_v3 = vadd.s32 56, %v1457_v24 }
 0x226   :  { %v517_v36 = vpop.permute.xlu1 %516  ;;  %713 = vadd.xlane.f32.xlu1 %v694_v11  ;;  %v702_v54 = vsel %vm1500_vm14, %v1059_v37, 0.0  ;;  %v636_v23 = vadd.s32 120, %v1457_v24 }
 0x227   :  { %1068 = vpow2.f32 %v599_v4  ;;  %v566_v45 = vsub.f32 %v1258_v39, %v517_v36  ;;  %v557_v39 = vpop.permute.xlu0 %556  ;;  %vm665_vm10 = vcmp.ne.s32.totalorder %v628_v3, %v1462_v59  ;;  %v634_v36 = vadd.s32 104, %v1457_v24  ;;  %v457_v3 = vld [vmem:[#allocation3 + $0x50] sm:$0xff] }
 0x228   :  { %v1061_v53 = vpop.eup %1060  ;;  %v574_v33 = vsub.f32 %v1264_v43, %v557_v39  ;;  %vm682_vm11 = vmand %vm665_vm10, %vm674_vm2 }
 0x229   :  { %v589_v40 = vmul.f32 1.442695, %v566_v45  ;;  %v692_v19 = vsel %vm676_vm15, %v1061_v53, 0.0  ;;  %v1063_v38 = vpop.eup %1062  ;;  %v635_v45 = vadd.s32 112, %v1457_v24  ;;  %vm671_vm14 = vcmp.ne.s32.totalorder %v634_v36, %v1462_v59 }
 0x22a   :  { %v507_v34 = vpop.permute.xlu1 %506  ;;  %709 = vadd.xlane.f32.xlu0 %v692_v19  ;;  %729 = vadd.xlane.f32.xlu1 %v702_v54  ;;  %v700_v42 = vsel %vm1515_vm4, %v1063_v38, 0.0  ;;  %v605_v43 = vmul.f32 1.442695, %v574_v33  ;;  %vm688_vm1 = vmand %vm671_vm14, %vm674_vm2  ;;  %vm673_vm4 = vcmp.ne.s32.totalorder %v636_v23, %v1462_v59  ;;  %v1690_v33 = vsub.f32 %v1306_v57, %v1320_v63 }
 0x22b   :  { %1070 = vpow2.f32 %v589_v40  ;;  %v564_v50 = vsub.f32 %v1270_v46, %v507_v34  ;;  %vm672_vm15 = vcmp.ne.s32.totalorder %v635_v45, %v1462_v59  ;;  %v1691_v59 = vsub.f32 %v1325_v1, %v1340_v7 }
 0x22c   :  { %v1065_v25 = vpop.eup %1064  ;;  %vm689_vm3 = vmand %vm672_vm15, %vm674_vm2  ;;  %v1695_v1 = vsub.f32 %v1345_v9, %v1360_v15 }
 0x22d   :  { %v585_v22 = vmul.f32 1.442695, %v564_v50  ;;  %v697_v31 = vsel %vm681_vm5, %v1065_v25, 0.0  ;;  %vm690_vm5 = vmand %vm673_vm4, %vm674_vm2  ;;  %v1688_v50 = vsub.f32 %v1298_v52, %v1304_v56  ;;  %v1689_v25 = vsub.f32 %v1296_v51, %v1301_v55 }
 0x22e   :  { %v552_v32 = vpop.permute.xlu1 %551  ;;  %719 = vadd.xlane.f32.xlu0 %v697_v31  ;;  %725 = vadd.xlane.f32.xlu1 %v700_v42  ;;  %v431_v31 = vmul.f32 1.442695, %v1691_v59  ;;  %v1692_v42 = vsub.f32 %v1308_v58, %v1323_v0  ;;  %v1693_v51 = vsub.f32 %v1327_v2, %v1343_v8  ;;  %v1694_v56 = vsub.f32 %v1347_v10, %v1363_v16  ;;  %v447_v10 = vld [vmem:[#allocation3] sm:$0xff] }
 0x22f   :  { %1072 = vpow2.f32 %v585_v22  ;;  %v573_v46 = vsub.f32 %v1290_v49, %v552_v32  ;;  %v419_v20 = vmul.f32 1.442695, %v1688_v50  ;;  %v415_v22 = vmul.f32 1.442695, %v1690_v33  ;;  %v449_v32 = vld [vmem:[#allocation3 + $0x10] sm:$0xff] }
 0x230   :  { %v1067_v26 = vpop.eup %1066  ;;  %1074 = vpow2.f32 %v601_v21  ;;  %v435_v21 = vmul.f32 1.442695, %v1689_v25  ;;  %v421_v52 = vmul.f32 1.442695, %v1692_v42  ;;  %v437_v55 = vmul.f32 1.442695, %v1693_v51 }
 0x231   :  { %v603_v4 = vmul.f32 1.442695, %v573_v46  ;;  %v695_v11 = vsel %vm679_vm7, %v1067_v26, 0.0  ;;  %v417_v57 = vmul.f32 1.442695, %v1694_v56  ;;  %v1696_v58 = vsub.f32 %v1365_v17, %v1380_v27  ;;  %v455_v27 = vld [vmem:[#allocation3 + $0x40] sm:$0xff] }
 0x232   :  { %715 = vadd.xlane.f32.xlu0 %v695_v11  ;;  %v433_v7 = vmul.f32 1.442695, %v1695_v1  ;;  %v1697_v16 = vsub.f32 %v1385_v29, %v1399_v41  ;;  %v1700_v50 = vsub.f32 %v1406_v48, %v1421_v6  ;;  %v456_v42 = vld [vmem:[#allocation3 + $0x48] sm:$0xff]  ;;  %v1701_v51 = vsub.f32 %v1423_v13, %v1437_v61  ;;  %v451_v13 = vld [vmem:[#allocation3 + $0x20] sm:$0xff] }
 0x233   :  { %1076 = vpow2.f32 %v603_v4  ;;  %v427_v0 = vmul.f32 1.442695, %v1696_v58  ;;  %v1702_v56 = vsub.f32 %v1425_v14, %v1440_v62 }
 0x234   :  { %v1069_v37 = vpop.eup %1068  ;;  %1078 = vpow2.f32 %v605_v43  ;;  %v423_v4 = vmul.f32 1.442695, %v1697_v16 }
 0x235   :  { %v703_v49 = vsel %vm687_vm9, %v1069_v37, 0.0  ;;  %1080 = vpow2.f32 %v419_v20  ;;  %v425_v20 = vmul.f32 1.442695, %v1700_v50  ;;  %v849_v50 = vld [vmem:[#allocation2 + $0x40] sm:$0xff] }
 0x236   :  { %731 = vadd.xlane.f32.xlu0 %v703_v49  ;;  %1082 = vpow2.f32 %v435_v21  ;;  %v1698_v49 = vsub.f32 %v1404_v47, %v1418_v5 }
 0x237   :  { %1084 = vpow2.f32 %v415_v22 }
 0x238   :  { %v1071_v60 = vpop.eup %1070  ;;  %1086 = vpow2.f32 %v431_v31  ;;  %v439_v36 = vmul.f32 1.442695, %v1698_v49 }
 0x239   :  { %v698_v53 = vsel %vm682_vm11, %v1071_v60, 0.0  ;;  %1088 = vpow2.f32 %v421_v52  ;;  %v453_v52 = vld [vmem:[#allocation3 + $0x30] sm:$0xff] }
 0x23a   :  { %721 = vadd.xlane.f32.xlu1 %v698_v53  ;;  %1090 = vpow2.f32 %v437_v55  ;;  %v450_v53 = vld [vmem:[#allocation3 + $0x18] sm:$0xff]  ;;  %v443_v55 = vmul.f32 1.442695, %v1701_v51 }
 0x23b   :  { %1092 = vpow2.f32 %v417_v57  ;;  %v441_v57 = vmul.f32 1.442695, %v1702_v56 }
 0x23c   :  { %v1073_v40 = vpop.eup %1072  ;;  %1094 = vpow2.f32 %v433_v7 }
 0x23d   :  { %v696_v19 = vsel %vm680_vm13, %v1073_v40, 0.0  ;;  %v1075_v54 = vpop.eup %1074  ;;  %1096 = vpow2.f32 %v427_v0  ;;  %v1699_v40 = vsub.f32 %v1367_v18, %v1383_v28 }
 0x23e   :  { %717 = vadd.xlane.f32.xlu1 %v696_v19  ;;  %v704_v39 = vsel %vm688_vm1, %v1075_v54, 0.0  ;;  %1098 = vpow2.f32 %v423_v4 }
 0x23f   :  { %v429_v19 = vmul.f32 1.442695, %v1699_v40  ;;  %1100 = vpow2.f32 %v439_v36  ;;  %v841_v40 = vld [vmem:[#allocation2] sm:$0xff] }
 0x240   :  { %v1077_v35 = vpop.eup %1076 }
 0x241   :  { %v705_v38 = vsel %vm689_vm3, %v1077_v35, 0.0  ;;  %v1079_v34 = vpop.eup %1078 }
 0x242   :  { %735 = vadd.xlane.f32.xlu0 %v705_v38  ;;  %733 = vadd.xlane.f32.xlu1 %v704_v39  ;;  %v706_v24 = vsel %vm690_vm5, %v1079_v34, 0.0  ;;  %v1081_v63 = vpop.eup %1080  ;;  %v458_v39 = vld [vmem:[#allocation3 + $0x58] sm:$0xff]  ;;  %v448_v34 = vld [vmem:[#allocation3 + $0x8] sm:$0xff] }
 0x243   :  { %v465_v46 = vmul.f32 %v1081_v63, %v449_v32  ;;  %v1083_v2 = vpop.eup %1082 }
 0x244   :  { %v1085_v26 = vpop.eup %1084  ;;  %v473_v9 = vmul.f32 %v1083_v2, %v457_v3  ;;  %v1703_v2 = vsub.f32 %v1387_v30, %v1402_v44 }
 0x245   :  { %v1087_v15 = vpop.eup %1086  ;;  %v463_v11 = vmul.f32 %v1085_v26, %v447_v10  ;;  %v459_v10 = vld [vmem:[#allocation3 + $0x60] sm:$0xff] }
 0x246   :  { %737 = vadd.xlane.f32.xlu1 %v706_v24  ;;  %v471_v60 = vmul.f32 %v1087_v15, %v455_v27  ;;  %v1089_v29 = vpop.eup %1088  ;;  %v445_v14 = vmul.f32 1.442695, %v1703_v2 }
 0x247   :  { %v1091_v35 = vpop.eup %1090  ;;  %v466_v47 = vmul.f32 %v1089_v29, %v450_v53 }
 0x248   :  { %v1093_v5 = vpop.eup %1092  ;;  %v474_v21 = vmul.f32 %v1091_v35, %v458_v39 }
 0x249   :  { %v1095_v18 = vpop.eup %1094  ;;  %v464_v33 = vmul.f32 %v1093_v5, %v448_v34 }
 0x24a   :  { %v1097_v22 = vpop.eup %1096  ;;  %v472_v32 = vmul.f32 %v1095_v18, %v456_v42 }
 0x24b   :  { %v469_v1 = vmul.f32 %v1097_v22, %v453_v52  ;;  %v1099_v7 = vpop.eup %1098  ;;  %v460_v22 = vld [vmem:[#allocation3 + $0x68] sm:$0xff]  ;;  %v844_v52 = vld [vmem:[#allocation2 + $0x18] sm:$0xff] }
 0x24c   :  { %v467_v3 = vmul.f32 %v1099_v7, %v451_v13 }
 0x2a3   :  { %v712_v8 = vpop.xlane.xlu0 %711 }
 0x2a4   :  { %v741_v43 = vadd.f32 %v712_v8, %v465_v46  ;;  %v1101_v8 = vpop.eup %1100 }
 0x2a6   :  { %757 = vst.msk [vmem:[#allocation3 + $0x10] sm:$0xff] %vm44_vm0, %v741_v43 }
 0x2a7   :  { %v728_v17 = vpop.xlane.xlu0 %727 }
 0x2a8   :  { %v708_v12 = vpop.xlane.xlu1 %707  ;;  %v749_v37 = vadd.f32 %v728_v17, %v473_v9  ;;  %v843_v9 = vld [vmem:[#allocation2 + $0x10] sm:$0xff]  ;;  %v475_v17 = vmul.f32 %v1101_v8, %v459_v10 }
 0x2a9   :  { %v739_v45 = vadd.f32 %v708_v12, %v463_v11 }
 0x2aa   :  { %765 = vst.msk [vmem:[#allocation3 + $0x50] sm:$0xff] %vm44_vm0, %v749_v37  ;;  %v454_v37 = vld [vmem:[#allocation3 + $0x38] sm:$0xff] }
 0x2ab   :  { %755 = vst.msk [vmem:[#allocation3] sm:$0xff] %vm44_vm0, %v739_v45  ;;  %v724_v41 = vpop.xlane.xlu0 %723 }
 0x2ac   :  { %v747_v23 = vadd.f32 %v724_v41, %v471_v60  ;;  %v851_v60 = vld [vmem:[#allocation2 + $0x50] sm:$0xff] }
 0x2ad   :  { %v859_v54 = vld [vmem:[#allocation3 + $0x10] sm:$0xff] }
 0x2ae   :  { %1102 = vlog2.f32 %v859_v54  ;;  %763 = vst.msk [vmem:[#allocation3 + $0x40] sm:$0xff] %vm44_vm0, %v747_v23 }
 0x2af   :  { %v714_v38 = vpop.xlane.xlu1 %713  ;;  %1104 = vpow2.f32 %v429_v19 }
 0x2b0   :  { %v742_v24 = vadd.f32 %v714_v38, %v466_v47  ;;  %v452_v38 = vld [vmem:[#allocation3 + $0x28] sm:$0xff] }
 0x2b1   :  { %v867_v25 = vld [vmem:[#allocation3 + $0x50] sm:$0xff] }
 0x2b2   :  { %v857_v28 = vld [vmem:[#allocation3] sm:$0xff]  ;;  %1106 = vlog2.f32 %v867_v25  ;;  %758 = vst.msk [vmem:[#allocation3 + $0x18] sm:$0xff] %vm44_vm0, %v742_v24 }
 0x2b3   :  { %1108 = vlog2.f32 %v857_v28  ;;  %v730_v59 = vpop.xlane.xlu1 %729  ;;  %v710_v31 = vpop.xlane.xlu0 %709 }
 0x2b4   :  { %v750_v48 = vadd.f32 %v730_v59, %v474_v21  ;;  %v740_v6 = vadd.f32 %v710_v31, %v464_v33  ;;  %1110 = vpow2.f32 %v425_v20  ;;  %v461_v59 = vld [vmem:[#allocation3 + $0x70] sm:$0xff] }
 0x2b5   :  { %v865_v63 = vld [vmem:[#allocation3 + $0x40] sm:$0xff] }
 0x2b6   :  { %1112 = vlog2.f32 %v865_v63  ;;  %766 = vst.msk [vmem:[#allocation3 + $0x58] sm:$0xff] %vm44_vm0, %v750_v48  ;;  %756 = vst.msk [vmem:[#allocation3 + $0x8] sm:$0xff] %vm44_vm0, %v740_v6 }
 0x2b7   :  { %v726_v58 = vpop.xlane.xlu1 %725  ;;  %v720_v0 = vpop.xlane.xlu0 %719  ;;  %1114 = vpow2.f32 %v443_v55 }
 0x2b8   :  { %v748_v61 = vadd.f32 %v726_v58, %v472_v32  ;;  %v745_v46 = vadd.f32 %v720_v0, %v469_v1  ;;  %1116 = vpow2.f32 %v441_v57  ;;  %v462_v1 = vld [vmem:[#allocation3 + $0x78] sm:$0xff] }
 0x2b9   :  { %v860_v62 = vld [vmem:[#allocation3 + $0x18] sm:$0xff] }
 0x2ba   :  { %1118 = vlog2.f32 %v860_v62  ;;  %764 = vst.msk [vmem:[#allocation3 + $0x48] sm:$0xff] %vm44_vm0, %v748_v61  ;;  %761 = vst.msk [vmem:[#allocation3 + $0x30] sm:$0xff] %vm44_vm0, %v745_v46  ;;  %v852_v61 = vld [vmem:[#allocation2 + $0x58] sm:$0xff] }
 0x2bb   :  { %v1103_v26 = vpop.eup %1102  ;;  %v716_v43 = vpop.xlane.xlu0 %715  ;;  %1120 = vpow2.f32 %v445_v14  ;;  %v842_v14 = vld [vmem:[#allocation2 + $0x8] sm:$0xff] }
 0x2bc   :  { %v878_v16 = vmul.f32 0.6931472, %v1103_v26  ;;  %v743_v4 = vadd.f32 %v716_v43, %v467_v3  ;;  %v1105_v30 = vpop.eup %1104 }
 0x2bd   :  { %v868_v15 = vld [vmem:[#allocation3 + $0x58] sm:$0xff]  ;;  %v858_v11 = vld [vmem:[#allocation3 + $0x8] sm:$0xff]  ;;  %v470_v54 = vmul.f32 %v1105_v30, %v454_v37  ;;  %v847_v30 = vld [vmem:[#allocation2 + $0x30] sm:$0xff] }
 0x2be   :  { %v907_v44 = vadd.f32 %v878_v16, %v843_v9  ;;  %1122 = vlog2.f32 %v868_v15  ;;  %759 = vst.msk [vmem:[#allocation3 + $0x20] sm:$0xff] %vm44_vm0, %v743_v4  ;;  %v850_v9 = vld [vmem:[#allocation2 + $0x48] sm:$0xff]  ;;  %v845_v37 = vld [vmem:[#allocation2 + $0x20] sm:$0xff] }
 0x2bf   :  { %v1107_v27 = vpop.eup %1106  ;;  %1124 = vlog2.f32 %v858_v11  ;;  %v732_v12 = vpop.xlane.xlu0 %731 }
 0x2c0   :  { %v1109_v49 = vpop.eup %1108  ;;  %923 = vst.msk [vmem:[%s1683_s2 + $0x10] sm:$0xff] %vm44_vm0, %v907_v44  ;;  %v894_v36 = vmul.f32 0.6931472, %v1107_v27  ;;  %v751_v45 = vadd.f32 %v732_v12, %v475_v17 }
 0x2c1   :  { %v874_v29 = vmul.f32 0.6931472, %v1109_v49  ;;  %v866_v41 = vld [vmem:[#allocation3 + $0x48] sm:$0xff]  ;;  %v863_v53 = vld [vmem:[#allocation3 + $0x30] sm:$0xff]  ;;  %v1111_v23 = vpop.eup %1110 }
 0x2c2   :  { %v915_v19 = vadd.f32 %v894_v36, %v851_v60  ;;  %1126 = vlog2.f32 %v866_v41  ;;  %767 = vst.msk [vmem:[#allocation3 + $0x60] sm:$0xff] %vm44_vm0, %v751_v45  ;;  %v468_v28 = vmul.f32 %v1111_v23, %v452_v38  ;;  %v853_v41 = vld [vmem:[#allocation2 + $0x60] sm:$0xff]  ;;  %v846_v38 = vld [vmem:[#allocation2 + $0x28] sm:$0xff] }
 0x2c3   :  { %v1113_v35 = vpop.eup %1112  ;;  %v905_v47 = vadd.f32 %v874_v29, %v841_v40  ;;  %1128 = vlog2.f32 %v863_v53  ;;  %v722_v5 = vpop.xlane.xlu1 %721 }
 0x2c4   :  { %931 = vst.msk [vmem:[%s1683_s2 + $0x50] sm:$0xff] %vm44_vm0, %v915_v19  ;;  %v890_v39 = vmul.f32 0.6931472, %v1113_v35  ;;  %v746_v34 = vadd.f32 %v722_v5, %v470_v54  ;;  %v1115_v24 = vpop.eup %1114  ;;  %v848_v54 = vld [vmem:[#allocation2 + $0x38] sm:$0xff] }
 0x2c5   :  { %921 = vst.msk [vmem:[%s1683_s2] sm:$0xff] %vm44_vm0, %v905_v47  ;;  %v861_v20 = vld [vmem:[#allocation3 + $0x20] sm:$0xff]  ;;  %v1117_v25 = vpop.eup %1116  ;;  %v477_v56 = vmul.f32 %v1115_v24, %v461_v59  ;;  %v856_v59 = vld [vmem:[#allocation2 + $0x78] sm:$0xff] }
 0x2c6   :  { %v913_v18 = vadd.f32 %v890_v39, %v849_v50  ;;  %1130 = vlog2.f32 %v861_v20  ;;  %762 = vst.msk [vmem:[#allocation3 + $0x38] sm:$0xff] %vm44_vm0, %v746_v34  ;;  %v476_v6 = vmul.f32 %v1117_v25, %v460_v22  ;;  %v854_v20 = vld [vmem:[#allocation2 + $0x68] sm:$0xff] }
 0x2c7   :  { %v1119_v21 = vpop.eup %1118  ;;  %v718_v33 = vpop.xlane.xlu1 %717 }
 0x2c8   :  { %929 = vst.msk [vmem:[%s1683_s2 + $0x40] sm:$0xff] %vm44_vm0, %v913_v18  ;;  %v880_v31 = vmul.f32 0.6931472, %v1119_v21  ;;  %v744_v42 = vadd.f32 %v718_v33, %v468_v28  ;;  %v1121_v55 = vpop.eup %1120  ;;  %v855_v18 = vld [vmem:[#allocation2 + $0x70] sm:$0xff] }
 0x2c9   :  { %v869_v51 = vld [vmem:[#allocation3 + $0x60] sm:$0xff]  ;;  %v478_v8 = vmul.f32 %v1121_v55, %v462_v1 }
 0x2ca   :  { %v908_v48 = vadd.f32 %v880_v31, %v844_v52  ;;  %1132 = vlog2.f32 %v869_v51  ;;  %760 = vst.msk [vmem:[#allocation3 + $0x28] sm:$0xff] %vm44_vm0, %v744_v42 }
 0x2cb   :  { %v1123_v57 = vpop.eup %1122  ;;  %v734_v63 = vpop.xlane.xlu1 %733 }
 0x2cc   :  { %v736_v32 = vpop.xlane.xlu0 %735  ;;  %v1125_v7 = vpop.eup %1124  ;;  %924 = vst.msk [vmem:[%s1683_s2 + $0x18] sm:$0xff] %vm44_vm0, %v908_v48  ;;  %v896_v58 = vmul.f32 0.6931472, %v1123_v57  ;;  %v752_v0 = vadd.f32 %v734_v63, %v476_v6 }
 0x2cd   :  { %v753_v13 = vadd.f32 %v736_v32, %v477_v56  ;;  %v876_v46 = vmul.f32 0.6931472, %v1125_v7  ;;  %v864_v2 = vld [vmem:[#allocation3 + $0x38] sm:$0xff] }
 0x2ce   :  { %v916_v62 = vadd.f32 %v896_v58, %v852_v61  ;;  %1134 = vlog2.f32 %v864_v2  ;;  %768 = vst.msk [vmem:[#allocation3 + $0x68] sm:$0xff] %vm44_vm0, %v752_v0 }
 0x2cf   :  { %769 = vst.msk [vmem:[#allocation3 + $0x70] sm:$0xff] %vm44_vm0, %v753_v13  ;;  %v1127_v3 = vpop.eup %1126  ;;  %v906_v26 = vadd.f32 %v876_v46, %v842_v14  ;;  %v738_v43 = vpop.xlane.xlu1 %737 }
 0x2d0   :  { %v1129_v10 = vpop.eup %1128  ;;  %932 = vst.msk [vmem:[%s1683_s2 + $0x58] sm:$0xff] %vm44_vm0, %v916_v62  ;;  %v892_v16 = vmul.f32 0.6931472, %v1127_v3  ;;  %v754_v4 = vadd.f32 %v738_v43, %v478_v8 }
 0x2d1   :  { %922 = vst.msk [vmem:[%s1683_s2 + $0x8] sm:$0xff] %vm44_vm0, %v906_v26  ;;  %v886_v15 = vmul.f32 0.6931472, %v1129_v10  ;;  %v862_v11 = vld [vmem:[#allocation3 + $0x28] sm:$0xff] }
 0x2d2   :  { %v914_v44 = vadd.f32 %v892_v16, %v850_v9  ;;  %1136 = vlog2.f32 %v862_v11  ;;  %770 = vst.msk [vmem:[#allocation3 + $0x78] sm:$0xff] %vm44_vm0, %v754_v4 }
 0x2d3   :  { %v1131_v17 = vpop.eup %1130  ;;  %v911_v27 = vadd.f32 %v886_v15, %v847_v30 }
 0x2d4   :  { %930 = vst.msk [vmem:[%s1683_s2 + $0x48] sm:$0xff] %vm44_vm0, %v914_v44  ;;  %v882_v12 = vmul.f32 0.6931472, %v1131_v17 }
 0x2d5   :  { %927 = vst.msk [vmem:[%s1683_s2 + $0x30] sm:$0xff] %vm44_vm0, %v911_v27  ;;  %v870_v49 = vld [vmem:[#allocation3 + $0x68] sm:$0xff] }
 0x2d6   :  { %v871_v36 = vld [vmem:[#allocation3 + $0x70] sm:$0xff]  ;;  %v909_v45 = vadd.f32 %v882_v12, %v845_v37  ;;  %1138 = vlog2.f32 %v870_v49 }
 0x2d7   :  { %v1133_v60 = vpop.eup %1132  ;;  %1140 = vlog2.f32 %v871_v36 }
 0x2d8   :  { %925 = vst.msk [vmem:[%s1683_s2 + $0x20] sm:$0xff] %vm44_vm0, %v909_v45  ;;  %v898_v29 = vmul.f32 0.6931472, %v1133_v60 }
 0x2d9   :  { %v872_v53 = vld [vmem:[#allocation3 + $0x78] sm:$0xff] }
 0x2da   :  { %v917_v23 = vadd.f32 %v898_v29, %v853_v41  ;;  %1142 = vlog2.f32 %v872_v53 }
 0x2db   :  { %v1135_v40 = vpop.eup %1134 }
 0x2dc   :  { %933 = vst.msk [vmem:[%s1683_s2 + $0x60] sm:$0xff] %vm44_vm0, %v917_v23  ;;  %v888_v19 = vmul.f32 0.6931472, %v1135_v40 }
 0x2de   :  { %v912_v35 = vadd.f32 %v888_v19, %v848_v54 }
 0x2df   :  { %v1137_v47 = vpop.eup %1136 }
 0x2e0   :  { %928 = vst.msk [vmem:[%s1683_s2 + $0x38] sm:$0xff] %vm44_vm0, %v912_v35  ;;  %v884_v5 = vmul.f32 0.6931472, %v1137_v47 }
 0x2e2   :  { %v910_v39 = vadd.f32 %v884_v5, %v846_v38 }
 0x2e3   :  { %v1139_v34 = vpop.eup %1138 }
 0x2e4   :  { %v1141_v24 = vpop.eup %1140  ;;  %926 = vst.msk [vmem:[%s1683_s2 + $0x28] sm:$0xff] %vm44_vm0, %v910_v39  ;;  %v900_v50 = vmul.f32 0.6931472, %v1139_v34 }
 0x2e5   :  { %v902_v25 = vmul.f32 0.6931472, %v1141_v24 }
 0x2e6   :  { %v918_v28 = vadd.f32 %v900_v50, %v854_v20 }
 0x2e7   :  { %v1143_v21 = vpop.eup %1142  ;;  %v919_v33 = vadd.f32 %v902_v25, %v855_v18 }
 0x2e8   :  { %934 = vst.msk [vmem:[%s1683_s2 + $0x68] sm:$0xff] %vm44_vm0, %v918_v28  ;;  %v904_v22 = vmul.f32 0.6931472, %v1143_v21 }
 0x2e9   :  { %935 = vst.msk [vmem:[%s1683_s2 + $0x70] sm:$0xff] %vm44_vm0, %v919_v33 }
 0x2ea   :  { %v920_v31 = vadd.f32 %v904_v22, %v856_v59 }
 0x2ec   :  { %936 = vst.msk [vmem:[%s1683_s2 + $0x78] sm:$0xff] %vm44_vm0, %v920_v31 }
 0x2ed   :  { %941 = vsyncpa [#allocation5], 1 }
 0x2ee   :  { %942 = vsyncpa [#allocation7], 1 }

</bundles_post_ra>
